<compile_context>
chip_gen: v5e
topology: v5e:2x2
jax: 0.10.0
libtpu: 0.0.40
codegen_flags: <defaults>
</compile_context>

<pallas_src>
from functools import partial

import numpy as np
import jax
import jax.numpy as jnp
from jax.experimental import pallas as pl
from jax.experimental.pallas import tpu as pltpu

# ---- static Net2(nf=3, nl=8) configuration -------------------------------------------------
NF   = 3            # self.nf: conv kernel height; also input H so conv_valid output is 1x1
NL   = 8            # self.nl: slice length along W; {8:1} -> exactly one conv block
B    = 2            # demo batch
H    = NF           # input height
W    = 40           # input width (needs W >= NL + 31 so ma32[..., -NL:] matches the others)
C1   = 4            # channels after the concat == conv1 in/out channels
KW1  = 3            # conv1 kernel width
W2   = NL // 2      # width after MaxPool2d((1,2),(1,2))
KWV  = 4            # conv_valid kernel width
NCLS = 2
BN_EPS = 1e-5

N_HALF   = C1 * H * W2        # 48: conv1 outputs of one maxpool parity, flattened (oc, h, w2)
LANES    = 128                # lane width of one vreg block
B_TILE   = 256                # batch tile: matches v6e/v7x 256-wide MXU (128 also fine on v5e)
NEG_MASK = -1e30              # softmax mask for the 126 padded logit lanes

assert W2 == KWV and H == NF, "demo config must give a 1x1 conv_valid output"
assert W >= NL + 31 and N_HALF <= LANES and (H * W) % 8 == 0
# TODO(synk): train-mode BatchNorm2d (batch statistics) and Dropout2d randomness are not
# reproduced; the kernel implements eval/inference semantics.  fc_scale / fc are unused in
# the PyTorch forward and therefore omitted.


def net2_kernel(x_ref, a_ref, c1_ref, m2_ref, bvm_ref, out_ref):
    """One grid step = one batch tile of the full Net2 forward.

    x_ref   : VMEM (B_TILE, 120) f32   flattened input rows (H*W)
    a_ref   : VMEM (120, 256)   f32    folded (preproc . conv1 . BN-scale), parity-per-lane-block
    c1_ref  : VMEM (1, 256)     f32    folded (conv1 bias . BN) shift, same column layout
    m2_ref  : VMEM (128, 128)   f32    conv_valid weights (rows = pooled lanes, cols 0..1 = classes)
    bvm_ref : VMEM (1, 128)     f32    conv_valid bias in lanes 0..1, -1e30 mask elsewhere
    out_ref : VMEM (B_TILE, 128) f32   softmax probs in lanes 0..1, zeros elsewhere
    """
    # preprocessing + concat + Conv2d('same') + BatchNorm(eval): one MXU matmul + one add
    y = jnp.dot(x_ref[...], a_ref[...],
                preferred_element_type=jnp.float32,
                precision=jax.lax.Precision.HIGHEST) + c1_ref[...]          # (B_TILE, 256)

    # ReLU + MaxPool2d((1,2),(1,2)): lane-block 0 = even-w outputs, block 1 = odd-w outputs,
    # relu(max(a,b)) == max(relu(a), relu(b)) -> one full-vreg max + relu, no lane shuffles.
    pooled = jnp.maximum(jnp.maximum(y[:, :LANES], y[:, LANES:]), 0.0)      # (B_TILE, 128)

    # Dropout2d(0.5): identity under inference semantics.

    # Conv2d(4,2,(NF,4),'valid') -> flatten: second tiny MXU matmul (MXU is idle here anyway).
    logits = jnp.dot(pooled, m2_ref[...],
                     preferred_element_type=jnp.float32,
                     precision=jax.lax.Precision.HIGHEST) + bvm_ref[...]    # (B_TILE, 128)

    # Softmax(dim=1) over 128 lanes; lanes 2..127 carry -1e30 so they exp to exactly 0.
    m = jnp.max(logits, axis=1, keepdims=True)
    e = jnp.exp(logits - m)
    out_ref[...] = e / jnp.sum(e, axis=1, keepdims=True)


def fold_params(w1, b1, gamma, beta, run_mean, run_var, wv, bv):
    """Host-side, weights-only folding of the linear prefix.  Runs ONCE per weight set.

    Returns
      A   (120, 256): x_flat -> BN-scaled conv1 outputs; even-w cols in lanes [0,48) of block 0,
                      odd-w cols in lanes [0,48) of block 1, zeros elsewhere
      c1  (1, 256)  : per-output-column shift = b1*bn_scale + (beta - mean*bn_scale)
      m2  (128,128) : conv_valid weights over pooled (oc, h, w2) rows; cols 0..1 = classes
      bvm (1, 128)  : conv_valid bias in lanes 0..1, -1e30 softmax mask in lanes 2..127
    """
    w1n = np.asarray(w1, np.float64)     # (C1, C1, NF, KW1), OIHW
    b1n = np.asarray(b1, np.float64)
    g   = np.asarray(gamma, np.float64)
    bt  = np.asarray(beta, np.float64)
    rm  = np.asarray(run_mean, np.float64)
    rv  = np.asarray(run_var, np.float64)
    wvn = np.asarray(wv, np.float64)     # (NCLS, C1, NF, KWV)
    bvn = np.asarray(bv, np.float64)

    bn_scale = g / np.sqrt(rv + BN_EPS)
    shift = b1n * bn_scale + (bt - rm * bn_scale)   # conv1 bias folded into the BN shift

    # PreM: (H*W, C1*H*NL) mapping x_flat -> concat(x, ma8, ma16, ma32)[..., -NL:] (ic, h, w)
    pre = np.zeros((H * W, C1 * H * NL), np.float64)
    for h in range(H):
        for w in range(NL):
            col = h * NL + w
            e = W - NL + w                                   # ending column of the window
            pre[h * W + e, 0 * H * NL + col] = 1.0           # raw signal channel
            for ci, k in ((1, 8), (2, 16), (3, 32)):         # moving averages
                for t in range(k):
                    pre[h * W + (e - t), ci * H * NL + col] += 1.0 / k

    # M1: (C1*H*NL, 256) mapping concat -> bn_scale * conv1('same') output, lane-block layout:
    #     col = (w_out % 2) * 128 + oc*H*W2 + h*W2 + (w_out // 2)
    m1 = np.zeros((C1 * H * NL, 2 * LANES), np.float64)
    c1 = np.zeros((1, 2 * LANES), np.float64)
    for oc in range(C1):
        for h in range(H):
            for w_out in range(NL):
                col = (w_out % 2) * LANES + oc * (H * W2) + h * W2 + (w_out // 2)
                c1[0, col] = shift[oc]
                for ic in range(C1):
                    for kh in range(NF):
                        hin = h + kh - (NF - 1) // 2         # 'same' padding along H
                        if not (0 <= hin < H):
                            continue
                        for kw in range(KW1):
                            win = w_out + kw - (KW1 - 1) // 2  # 'same' padding along W
                            if not (0 <= win < NL):
                                continue
                            m1[ic * (H * NL) + hin * NL + win, col] += (
                                w1n[oc, ic, kh, kw] * bn_scale[oc])

    a = pre @ m1                                             # (120, 256)

    # conv_valid weights as a (128, 128) matmul slab over pooled (oc, h, w2) rows
    m2 = np.zeros((LANES, LANES), np.float64)
    for cls in range(NCLS):
        for ic in range(C1):
            for kh in range(NF):
                for kw in range(KWV):
                    m2[ic * (H * W2) + kh * W2 + kw, cls] = wvn[cls, ic, kh, kw]
    bvm = np.full((1, LANES), NEG_MASK, np.float64)
    bvm[0, :NCLS] = bvn

    return (jnp.asarray(a, jnp.float32), jnp.asarray(c1, jnp.float32),
            jnp.asarray(m2, jnp.float32), jnp.asarray(bvm, jnp.float32))


@partial(jax.jit, static_argnames=("b_tile",))
def _net2_pallas(x2, a, c1, m2, bvm, *, b_tile):
    bpad = x2.shape[0]
    return pl.pallas_call(
        net2_kernel,
        out_shape=jax.ShapeDtypeStruct((bpad, LANES), jnp.float32),
        grid=(bpad // b_tile,),
        in_specs=[
            pl.BlockSpec((b_tile, H * W), lambda i: (i, 0)),     # x tile marches over batch
            pl.BlockSpec((H * W, 2 * LANES), lambda i: (0, 0)),  # A   (block-invariant)
            pl.BlockSpec((1, 2 * LANES), lambda i: (0, 0)),      # c1  (block-invariant)
            pl.BlockSpec((LANES, LANES), lambda i: (0, 0)),      # m2  (block-invariant)
            pl.BlockSpec((1, LANES), lambda i: (0, 0)),          # bvm (block-invariant)
        ],
        out_specs=pl.BlockSpec((b_tile, LANES), lambda i: (i, 0)),
        compiler_params=pltpu.CompilerParams(
            dimension_semantics=("parallel",)),                   # shard batch over TCs (v7x)
    )(x2, a, c1, m2, bvm)


def _round_up(n, m):
    return ((n + m - 1) // m) * m


def make_net2(w1, b1, gamma, beta, run_mean, run_var, wv, bv):
    """Fold the weights ONCE and return a fast forward(x) closure.

    forward(x): x (Bn, 1, H, W) f32 NCHW -> (Bn, 2) softmax probabilities.
    """
    folded = fold_params(w1, b1, gamma, beta, run_mean, run_var, wv, bv)
    folded = tuple(jax.device_put(p) for p in folded)            # resident on device

    def forward(x):
        bn = x.shape[0]
        x2 = jnp.asarray(x, jnp.float32).reshape(bn, H * W)
        b_tile = B_TILE if bn >= B_TILE else _round_up(bn, 8)    # tiny batches: one 8-row block
        bpad = _round_up(bn, b_tile)
        if bpad != bn:
            x2 = jnp.pad(x2, ((0, bpad - bn), (0, 0)))           # batch (sublane) pad only
        probs = _net2_pallas(x2, *folded, b_tile=b_tile)
        return probs[:bn, :NCLS]

    return forward


def net2_reference(x, w1, b1, gamma, beta, run_mean, run_var, wv, bv):
    """Pure-JAX eval-mode reference (NCHW) mirroring the PyTorch forward, for self-check."""
    hp = jax.lax.Precision.HIGHEST

    def avg_pool_w(v, k):
        s = jax.lax.reduce_window(v, jnp.float32(0.0), jax.lax.add,
                                  (1, 1, 1, k), (1, 1, 1, 1), 'VALID')
        return s / k

    ma8, ma16, ma32 = avg_pool_w(x, 8), avg_pool_w(x, 16), avg_pool_w(x, 32)
    xc = jnp.concatenate([x[..., -NL:], ma8[..., -NL:], ma16[..., -NL:], ma32[..., -NL:]], axis=1)
    dn = ('NCHW', 'OIHW', 'NCHW')
    y = jax.lax.conv_general_dilated(xc, w1, (1, 1), 'SAME', dimension_numbers=dn, precision=hp)
    y = y + b1[None, :, None, None]
    y = (y - run_mean[None, :, None, None]) / jnp.sqrt(run_var[None, :, None, None] + BN_EPS)
    y = y * gamma[None, :, None, None] + beta[None, :, None, None]
    y = jnp.maximum(y, 0.0)
    y = jax.lax.reduce_window(y, jnp.float32(-jnp.inf), jax.lax.max,
                              (1, 1, 1, 2), (1, 1, 1, 2), 'VALID')
    z = jax.lax.conv_general_dilated(y, wv, (1, 1), 'VALID', dimension_numbers=dn, precision=hp)
    z = z + bv[None, :, None, None]
    z = z.reshape(z.shape[0], -1)
    return jax.nn.softmax(z, axis=1)


if __name__ == "__main__":
    key = jax.random.PRNGKey(0)
    ks = jax.random.split(key, 9)
    x        = jax.random.normal(ks[0], (B, 1, H, W), jnp.float32)
    w1       = jax.random.normal(ks[1], (C1, C1, NF, KW1), jnp.float32) * 0.3
    b1       = jax.random.normal(ks[2], (C1,), jnp.float32) * 0.1
    gamma    = 1.0 + 0.1 * jax.random.normal(ks[3], (C1,), jnp.float32)
    beta     = 0.1 * jax.random.normal(ks[4], (C1,), jnp.float32)
    run_mean = 0.1 * jax.random.normal(ks[5], (C1,), jnp.float32)
    run_var  = jax.random.uniform(ks[6], (C1,), jnp.float32, 0.5, 1.5)
    wv       = jax.random.normal(ks[7], (NCLS, C1, NF, KWV), jnp.float32) * 0.3
    bv       = jax.random.normal(ks[8], (NCLS,), jnp.float32) * 0.1

    # Weight folding happens exactly once here; forward() is the cheap per-call path.
    net2 = make_net2(w1, b1, gamma, beta, run_mean, run_var, wv, bv)

    # Small-batch path (B=2 -> one 8-row block, grid of 1).
    out = jax.block_until_ready(net2(x))
    ref = net2_reference(x, w1, b1, gamma, beta, run_mean, run_var, wv, bv)
    assert out.shape == (B, NCLS)
    assert jnp.allclose(out, ref, atol=1e-4, rtol=1e-4), (out, ref)

    # Batched path (grid > 1, 256-row MXU tiles, batch padding) re-using the cached fold.
    xb = jax.random.normal(jax.random.PRNGKey(1), (300, 1, H, W), jnp.float32)
    outb = jax.block_until_ready(net2(xb))
    refb = net2_reference(xb, w1, b1, gamma, beta, run_mean, run_var, wv, bv)
    assert outb.shape == (300, NCLS)
    assert jnp.allclose(outb, refb, atol=1e-4, rtol=1e-4), (outb, refb)

    print("KERNEL_OK")
</pallas_src>

<mosaic_0001>
module attributes {stable_mosaic.version = 11 : i64} {
  func.func @net2_kernel(%arg0: i32, %arg1: memref<8x120xf32, #tpu.memory_space<vmem>>, %arg2: memref<120x256xf32, #tpu.memory_space<vmem>>, %arg3: memref<1x256xf32, #tpu.memory_space<vmem>>, %arg4: memref<128x128xf32, #tpu.memory_space<vmem>>, %arg5: memref<1x128xf32, #tpu.memory_space<vmem>>, %arg6: memref<8x128xf32, #tpu.memory_space<vmem>>) attributes {dimension_semantics = [#tpu.dimension_semantics<parallel>], iteration_bounds = array<i64: 1>, scalar_prefetch = 0 : i64, scratch_operands = 0 : i64, tpu.core_type = #tpu.core_type<tc>, window_params = [{transform_indices = @transform_0, window_bounds = array<i64: 8, 120>}, {pipeline_mode = #tpu.pipeline_mode<synchronous>, transform_indices = @transform_1, window_bounds = array<i64: 120, 256>}, {pipeline_mode = #tpu.pipeline_mode<synchronous>, transform_indices = @transform_2, window_bounds = array<i64: 1, 256>}, {pipeline_mode = #tpu.pipeline_mode<synchronous>, transform_indices = @transform_3, window_bounds = array<i64: 128, 128>}, {pipeline_mode = #tpu.pipeline_mode<synchronous>, transform_indices = @transform_4, window_bounds = array<i64: 1, 128>}, {transform_indices = @transform_5, window_bounds = array<i64: 8, 128>}]} {
    %c0 = arith.constant 0 : index
    %c0_0 = arith.constant 0 : index
    %0 = vector.load %arg1[%c0, %c0_0] : memref<8x120xf32, #tpu.memory_space<vmem>>, vector<8x120xf32>
    %c0_1 = arith.constant 0 : index
    %c0_2 = arith.constant 0 : index
    %1 = vector.load %arg2[%c0_1, %c0_2] : memref<120x256xf32, #tpu.memory_space<vmem>>, vector<120x256xf32>
    %cst = arith.constant dense<0.000000e+00> : vector<8x256xf32>
    %2 = tpu.matmul %0, %1, %cst {dimension_numbers = #tpu.dot_dimension_numbers<[1], [0], [0], [1], [0, 0, 1, 1], [], []>, precision = #tpu.contract_precision<fp32>} : vector<8x120xf32>, vector<120x256xf32>, vector<8x256xf32> -> vector<8x256xf32>
    %c0_3 = arith.constant 0 : index
    %c0_4 = arith.constant 0 : index
    %3 = vector.load %arg3[%c0_3, %c0_4] : memref<1x256xf32, #tpu.memory_space<vmem>>, vector<1x256xf32>
    %4 = vector.broadcast %3 : vector<1x256xf32> to vector<8x256xf32>
    %5 = arith.addf %2, %4 : vector<8x256xf32>
    %6 = vector.extract_strided_slice %5 {offsets = [0, 0], sizes = [8, 128], strides = [1, 1]} : vector<8x256xf32> to vector<8x128xf32>
    %7 = vector.extract_strided_slice %5 {offsets = [0, 128], sizes = [8, 128], strides = [1, 1]} : vector<8x256xf32> to vector<8x128xf32>
    %8 = arith.maximumf %6, %7 : vector<8x128xf32>
    %cst_5 = arith.constant 0.000000e+00 : f32
    %9 = vector.broadcast %cst_5 : f32 to vector<8x128xf32>
    %10 = arith.maximumf %8, %9 : vector<8x128xf32>
    %c0_6 = arith.constant 0 : index
    %c0_7 = arith.constant 0 : index
    %11 = vector.load %arg4[%c0_6, %c0_7] : memref<128x128xf32, #tpu.memory_space<vmem>>, vector<128x128xf32>
    %cst_8 = arith.constant dense<0.000000e+00> : vector<8x128xf32>
    %12 = tpu.matmul %10, %11, %cst_8 {dimension_numbers = #tpu.dot_dimension_numbers<[1], [0], [0], [1], [0, 0, 1, 1], [], []>, precision = #tpu.contract_precision<fp32>} : vector<8x128xf32>, vector<128x128xf32>, vector<8x128xf32> -> vector<8x128xf32>
    %c0_9 = arith.constant 0 : index
    %c0_10 = arith.constant 0 : index
    %13 = vector.load %arg5[%c0_9, %c0_10] : memref<1x128xf32, #tpu.memory_space<vmem>>, vector<1x128xf32>
    %14 = vector.broadcast %13 : vector<1x128xf32> to vector<8x128xf32>
    %15 = arith.addf %12, %14 : vector<8x128xf32>
    %cst_11 = arith.constant dense<0xFF800000> : vector<8xf32>
    %16 = vector.multi_reduction <maximumf>, %15, %cst_11 [1] : vector<8x128xf32> to vector<8xf32>
    %17 = vector.shape_cast %16 : vector<8xf32> to vector<8x1xf32>
    %18 = vector.broadcast %17 : vector<8x1xf32> to vector<8x128xf32>
    %19 = arith.subf %15, %18 : vector<8x128xf32>
    %20 = math.exp %19 : vector<8x128xf32>
    %cst_12 = arith.constant dense<0.000000e+00> : vector<8xf32>
    %21 = vector.multi_reduction <add>, %20, %cst_12 [1] : vector<8x128xf32> to vector<8xf32>
    %22 = vector.shape_cast %21 : vector<8xf32> to vector<8x1xf32>
    %23 = vector.broadcast %22 : vector<8x1xf32> to vector<8x128xf32>
    %24 = arith.divf %20, %23 : vector<8x128xf32>
    %c0_13 = arith.constant 0 : index
    %c0_14 = arith.constant 0 : index
    %25 = vector.load %arg6[%c0_13, %c0_14] : memref<8x128xf32, #tpu.memory_space<vmem>>, vector<8x128xf32>
    tpu.vector_store %arg6[%c0_13, %c0_14], %24 {strides = array<i32>} : memref<8x128xf32, #tpu.memory_space<vmem>>, vector<8x128xf32>,
    return
  }
  func.func @transform_0(%arg0: i32) -> (i32, i32) {
    %c0_i32 = arith.constant 0 : i32
    %c0_i32_0 = arith.constant 0 : i32
    return %arg0, %c0_i32 : i32, i32
  }
  func.func @transform_1(%arg0: i32) -> (i32, i32) {
    %c0_i32 = arith.constant 0 : i32
    %c0_i32_0 = arith.constant 0 : i32
    %c0_i32_1 = arith.constant 0 : i32
    return %c0_i32, %c0_i32_0 : i32, i32
  }
  func.func @transform_2(%arg0: i32) -> (i32, i32) {
    %c0_i32 = arith.constant 0 : i32
    %c0_i32_0 = arith.constant 0 : i32
    %c0_i32_1 = arith.constant 0 : i32
    return %c0_i32, %c0_i32_0 : i32, i32
  }
  func.func @transform_3(%arg0: i32) -> (i32, i32) {
    %c0_i32 = arith.constant 0 : i32
    %c0_i32_0 = arith.constant 0 : i32
    %c0_i32_1 = arith.constant 0 : i32
    return %c0_i32, %c0_i32_0 : i32, i32
  }
  func.func @transform_4(%arg0: i32) -> (i32, i32) {
    %c0_i32 = arith.constant 0 : i32
    %c0_i32_0 = arith.constant 0 : i32
    %c0_i32_1 = arith.constant 0 : i32
    return %c0_i32, %c0_i32_0 : i32, i32
  }
  func.func @transform_5(%arg0: i32) -> (i32, i32) {
    %c0_i32 = arith.constant 0 : i32
    %c0_i32_0 = arith.constant 0 : i32
    return %arg0, %c0_i32 : i32, i32
  }
}

</mosaic_0001>

<bundles_post_ra>
// kernel: _net2_pallas.1
= control target key start
LH: loop header
LB: loop body
LE: loop exit
PB: predicated region body
PF: predicated region fallthrough
CT: control target
= control target key end

     0   :  { %10 = vsyncpa [#allocation3], 0  ;;  %s1999_s0 = inlined_call_operand.hbm [shape: f32[8,120], index: 0, kind: input, shape index: {}]   ;;  %s2000_s1 = inlined_call_operand.hbm [shape: f32[120,256], index: 1, kind: input, shape index: {}]   ;;  %s2001_s2 = inlined_call_operand.hbm [shape: f32[1,256], index: 2, kind: input, shape index: {}]   ;;  %s2002_s3 = inlined_call_operand.hbm [shape: f32[128,128], index: 3, kind: input, shape index: {}]   ;;  %s2003_s4 = inlined_call_operand.vmem [shape: f32[1,128], index: 4, kind: input, shape index: {}]   ;;  %s2004_s5 = inlined_call_operand.hbm [shape: f32[8,128], index: 5, kind: output, shape index: {}]  }
   0x1   :  { %11 = vsyncpa [#allocation6], 0 }
   0x2   :  { %12 = vsyncpa [#allocation9], 0  ;;  %s29_s20 = sshll.u32 %s2000_s1, 4  ;;  %s30_s20 = int_to_ptr.hbm [resolvable:$true] %s29_s20 }
   0x3   :  { %13 = vsyncpa [#allocation4], 0  ;;  %s1324_s21 = smov [#allocation5]   ;;  %s19_s25 = sshll.u32 %s1999_s0, 4  ;;  %s20_s25 = int_to_ptr.hbm [resolvable:$true] %s19_s25 }
   0x4   :  { %s31_s22 = sshll.u32 %s1324_s21, 4  ;;  %s1325_s26 = smov 256   ;;  %s32_s22 = int_to_ptr.vmem [resolvable:$true] %s31_s22 }
   0x5   :  { %s1326_s27 = smov 16   ;;  %s1327_s28 = smov [#allocation2]  }
   0x6   :  { %37 = dma.hbm_to_vmem [thread:$0]  %s30_s20, 3840, %s32_s22, [#allocation6], %s1325_s26, %s1325_s26, %s1326_s27  }
   0x7   :  { %s21_s29 = sshll.u32 %s1327_s28, 4  ;;  %s43_s7 = sshll.u32 %s2001_s2, 4  ;;  %s22_s29 = int_to_ptr.vmem [resolvable:$true] %s21_s29  ;;  %s44_s7 = int_to_ptr.hbm [resolvable:$true] %s43_s7 }
   0x8   :  { %24 = dma.hbm_to_vmem [thread:$0]  %s20_s25, 128, %s22_s29, [#allocation3]  }
   0x9   :  { %s53_s9 = sshll.u32 %s2002_s3, 4  ;;  %s1328_s10 = smov [#allocation7]   ;;  %s54_s9 = int_to_ptr.hbm [resolvable:$true] %s53_s9 }
   0xa   :  { %s45_s11 = sshll.u32 %s1328_s10, 4  ;;  %s1329_s0 = smov [#allocation8]   ;;  %s46_s11 = int_to_ptr.vmem [resolvable:$true] %s45_s11 }
   0xb   :  { %48 = dma.hbm_to_vmem [thread:$0]  %s44_s7, 32, %s46_s11, [#allocation6]  }
   0xc   :  { %s55_s12 = sshll.u32 %s1329_s0, 4  ;;  %s1330_s13 = smov 128   ;;  %s56_s12 = int_to_ptr.vmem [resolvable:$true] %s55_s12 }
   0xd   :  { %s1331_s14 = smov 8  }
   0xe   :  { %61 = dma.hbm_to_vmem [thread:$0]  %s54_s9, 2048, %s56_s12, [#allocation9], %s1330_s13, %s1330_s13, %s1331_s14  }
   0xf   :  { %1316 = dma.done.wait [#allocation3], 128  }
  0x10   :  { %1317 = vsyncadd [#allocation3], 4294967168 }
  0x11   :  { %1318 = dma.done.wait [#allocation6], 3872  }
  0x12   :  { %1319 = vsyncadd [#allocation6], 4294963424 }
  0x13   :  { %1320 = dma.done.wait [#allocation9], 2048  }
  0x14   :  { %1321 = vsyncadd [#allocation9], 4294965248  ;;  %v109_v0 = vld [vmem:[#allocation5 + $0xe0] sm:$0xff]  ;;  %v107_v1 = vld [vmem:[#allocation5 + $0xd0] sm:$0xff]  ;;  %vm117_vm0 = vcmask 982016   ;;  %s1170_s18 = sshll.u32 %s2004_s5, 4  ;;  %s1171_s18 = int_to_ptr.hbm [resolvable:$true] %s1170_s18 }
  0x15   :  { %v105_v2 = vld [vmem:[#allocation5 + $0xc0] sm:$0xff]  ;;  %v1375_v3 = vand.u32 4294901760, %v109_v0  ;;  %v1377_v4 = vand.u32 4294901760, %v107_v1  ;;  %v103_v6 = vld [vmem:[#allocation5 + $0xb0] sm:$0xff] }
  0x16   :  { %v1379_v5 = vand.u32 4294901760, %v105_v2  ;;  %v101_v7 = vld [vmem:[#allocation5 + $0xa0] sm:$0xff]  ;;  %v99_v8 = vld [vmem:[#allocation5 + $0x90] sm:$0xff]  ;;  %v1381_v9 = vand.u32 4294901760, %v103_v6 }
  0x17   :  { %v1383_v10 = vand.u32 4294901760, %v101_v7  ;;  %v1385_v11 = vand.u32 4294901760, %v99_v8  ;;  %v97_v12 = vld [vmem:[#allocation5 + $0x80] sm:$0xff]  ;;  %v95_v13 = vld [vmem:[#allocation5 + $0x70] sm:$0xff]  ;;  %123 = vmatpush.msra.mxu2 %v1375_v3  ;;  %v1389_v14 = vsub.f32 %v109_v0, %v1375_v3  ;;  %v1392_v15 = vsub.f32 %v107_v1, %v1377_v4  ;;  %415 = vmatpush.msra.mxu1 %v1375_v3 }
  0x18   :  { %v1395_v16 = vsub.f32 %v105_v2, %v1379_v5  ;;  %v1397_v17 = vand.u32 4294901760, %v97_v12  ;;  %v1401_v18 = vsub.f32 %v103_v6, %v1381_v9  ;;  %v1406_v20 = vand.u32 4294901760, %v95_v13  ;;  %v93_v21 = vld [vmem:[#allocation5 + $0x60] sm:$0xff]  ;;  %v91_v34 = vld [vmem:[#allocation5 + $0x50] sm:$0xff] }
  0x19   :  { %v1404_v19 = vsub.f32 %v101_v7, %v1383_v10  ;;  %125 = vmatpush.msra.mxu2 %v1377_v4  ;;  %v164_v22 = vand.u32 4294901760, %v1389_v14  ;;  %v170_v23 = vand.u32 4294901760, %v1392_v15  ;;  %v1413_v25 = vsub.f32 %v99_v8, %v1385_v11  ;;  %417 = vmatpush.msra.mxu1 %v1377_v4  ;;  %v89_v35 = vld [vmem:[#allocation5 + $0x40] sm:$0xff]  ;;  %v87_v42 = vld [vmem:[#allocation5 + $0x30] sm:$0xff] }
  0x1a   :  { %v176_v24 = vand.u32 4294901760, %v1395_v16  ;;  %v182_v26 = vand.u32 4294901760, %v1401_v18  ;;  %v1419_v28 = vsub.f32 %v97_v12, %v1397_v17  ;;  %v1425_v32 = vand.u32 4294901760, %v93_v21  ;;  %v85_v48 = vld [vmem:[#allocation5 + $0x20] sm:$0xff]  ;;  %v83_v54 = vld [vmem:[#allocation5 + $0x10] sm:$0xff]  ;;  %v80_v12 = vld [vmem:[#allocation2] sm:$0xff] }
  0x1b   :  { %v188_v27 = vand.u32 4294901760, %v1404_v19  ;;  %v165_v29 = vsub.f32 %v1389_v14, %v164_v22  ;;  %127 = vmatpush.msra.mxu2 %v1379_v5  ;;  %v171_v30 = vsub.f32 %v1392_v15, %v170_v23  ;;  %351 = vmatpush.msra.mxu0 %v164_v22  ;;  %v1428_v33 = vsub.f32 %v95_v13, %v1406_v20  ;;  %v81_v59 = vld [vmem:[#allocation5] sm:$0xff] }
  0x1c   :  { %v177_v31 = vsub.f32 %v1395_v16, %v176_v24  ;;  %419 = vmatpush.msra.mxu1 %v1379_v5  ;;  %v183_v38 = vsub.f32 %v1401_v18, %v182_v26  ;;  %v194_v39 = vand.u32 4294901760, %v1413_v25  ;;  %v200_v41 = vand.u32 4294901760, %v1419_v28 }
  0x1d   :  { %v166_v36 = vand.u32 4294901760, %v165_v29  ;;  %v172_v37 = vand.u32 4294901760, %v171_v30  ;;  %129 = vmatpush.msra.mxu2 %v1381_v9  ;;  %355 = vmatpush.msra.mxu0 %v170_v23  ;;  %v189_v40 = vsub.f32 %v1404_v19, %v188_v27  ;;  %v1438_v44 = vand.u32 4294901760, %v91_v34 }
  0x1e   :  { %421 = vmatpush.msra.mxu1 %v1381_v9  ;;  %v178_v43 = vand.u32 4294901760, %v177_v31  ;;  %v1441_v45 = vsub.f32 %v93_v21, %v1425_v32  ;;  %v1443_v46 = vand.u32 4294901760, %v89_v35  ;;  %v206_v47 = vand.u32 4294901760, %v1428_v33 }
  0x1f   :  { %167 = vmatpush.msra.mxu3 %v166_v36  ;;  %131 = vmatpush.msra.mxu2 %v1383_v10  ;;  %v184_v49 = vand.u32 4294901760, %v183_v38  ;;  %v195_v50 = vsub.f32 %v1413_v25, %v194_v39  ;;  %v1450_v51 = vsub.f32 %v91_v34, %v1438_v44  ;;  %v1452_v52 = vand.u32 4294901760, %v87_v42 }
  0x20   :  { %359 = vmatpush.msra.mxu0 %v176_v24  ;;  %423 = vmatpush.msra.mxu1 %v1383_v10  ;;  %v201_v53 = vsub.f32 %v1419_v28, %v200_v41  ;;  %v190_v55 = vand.u32 4294901760, %v189_v40  ;;  %v212_v56 = vand.u32 4294901760, %v1441_v45  ;;  %v1459_v57 = vsub.f32 %v89_v35, %v1443_v46 }
  0x21   :  { %173 = vmatpush.msra.mxu3 %v172_v37  ;;  %133 = vmatpush.msra.mxu2 %v1385_v11  ;;  %v1461_v58 = vand.u32 4294901760, %v85_v48  ;;  %v207_v60 = vsub.f32 %v1428_v33, %v206_v47  ;;  %v196_v61 = vand.u32 4294901760, %v195_v50  ;;  %v218_v62 = vand.u32 4294901760, %v1450_v51 }
  0x22   :  { %363 = vmatpush.msra.mxu0 %v182_v26  ;;  %425 = vmatpush.msra.mxu1 %v1385_v11  ;;  %v1468_v63 = vsub.f32 %v87_v42, %v1452_v52  ;;  %v1470_v0 = vand.u32 4294901760, %v83_v54  ;;  %v202_v1 = vand.u32 4294901760, %v201_v53  ;;  %v1472_v2 = vand.u32 4294901760, %v81_v59 }
  0x23   :  { %179 = vmatpush.msra.mxu3 %v178_v43  ;;  %135 = vmatpush.msra.mxu2 %v1397_v17  ;;  %v213_v6 = vsub.f32 %v1441_v45, %v212_v56  ;;  %v224_v7 = vand.u32 4294901760, %v1459_v57  ;;  %v1479_v8 = vsub.f32 %v85_v48, %v1461_v58  ;;  %v208_v13 = vand.u32 4294901760, %v207_v60 }
  0x24   :  { %367 = vmatpush.msra.mxu0 %v188_v27  ;;  %427 = vmatpush.msra.mxu1 %v1397_v17  ;;  %v119_v21 = vsel %vm117_vm0, %v80_v12, 0  ;;  %v219_v22 = vsub.f32 %v1450_v51, %v218_v62  ;;  %v230_v23 = vand.u32 4294901760, %v1468_v63  ;;  %v1486_v24 = vsub.f32 %v83_v54, %v1470_v0  ;;  %v108_v54 = vld [vmem:[#allocation5 + $0xd8] sm:$0xff] }
  0x25   :  { %185 = vmatpush.msra.mxu3 %v184_v49  ;;  %137 = vmatpush.msra.mxu2 %v1406_v20  ;;  %v1488_v26 = vand.u32 4294901760, %v119_v21  ;;  %v1491_v27 = vsub.f32 %v81_v59, %v1472_v2  ;;  %v214_v29 = vand.u32 4294901760, %v213_v6  ;;  %v225_v30 = vsub.f32 %v1459_v57, %v224_v7  ;;  %v110_v49 = vld [vmem:[#allocation5 + $0xe8] sm:$0xff] }
  0x26   :  { %371 = vmatpush.msra.mxu0 %v194_v39  ;;  %429 = vmatpush.msra.mxu1 %v1406_v20  ;;  %v236_v31 = vand.u32 4294901760, %v1479_v8  ;;  %v220_v35 = vand.u32 4294901760, %v219_v22  ;;  %v231_v36 = vsub.f32 %v1468_v63, %v230_v23  ;;  %v242_v37 = vand.u32 4294901760, %v1486_v24  ;;  %v106_v59 = vld [vmem:[#allocation5 + $0xc8] sm:$0xff] }
  0x27   :  { %191 = vmatpush.msra.mxu3 %v190_v55  ;;  %139 = vmatpush.msra.mxu2 %v1425_v32  ;;  %v1498_v34 = vsub.f32 %v119_v21, %v1488_v26  ;;  %v226_v39 = vand.u32 4294901760, %v225_v30 }
  0x28   :  { %375 = vmatpush.msra.mxu0 %v200_v41  ;;  %431 = vmatpush.msra.mxu1 %v1425_v32  ;;  %v237_v40 = vsub.f32 %v1479_v8, %v236_v31  ;;  %v248_v41 = vand.u32 4294901760, %v1491_v27  ;;  %v232_v43 = vand.u32 4294901760, %v231_v36 }
  0x29   :  { %197 = vmatpush.msra.mxu3 %v196_v61  ;;  %141 = vmatpush.msra.mxu2 %v1438_v44  ;;  %v1505_v38 = vand.u32 4294901760, %v1498_v34  ;;  %v1526_v61 = vand.u32 4294901760, %v108_v54 }
  0x2a   :  { %379 = vmatpush.msra.mxu0 %v206_v47  ;;  %433 = vmatpush.msra.mxu1 %v1438_v44  ;;  %v243_v47 = vsub.f32 %v1486_v24, %v242_v37  ;;  %v238_v50 = vand.u32 4294901760, %v237_v40  ;;  %v249_v53 = vsub.f32 %v1491_v27, %v248_v41 }
  0x2b   :  { %203 = vmatpush.msra.mxu3 %v202_v1  ;;  %143 = vmatpush.msra.mxu2 %v1443_v46  ;;  %v155_v42 = vsub.f32 %v1498_v34, %v1505_v38  ;;  %v1533_v1 = vand.u32 4294901760, %v106_v59  ;;  %v1539_v6 = vsub.f32 %v108_v54, %v1526_v61 }
  0x2c   :  { %383 = vmatpush.msra.mxu0 %v212_v56  ;;  %435 = vmatpush.msra.mxu1 %v1443_v46  ;;  %v244_v55 = vand.u32 4294901760, %v243_v47  ;;  %v1523_v56 = vand.u32 4294901760, %v110_v49  ;;  %v250_v60 = vand.u32 4294901760, %v249_v53 }
  0x2d   :  { %209 = vmatpush.msra.mxu3 %v208_v13  ;;  %145 = vmatpush.msra.mxu2 %v1452_v52  ;;  %v1516_v48 = vand.u32 4294901760, %v155_v42  ;;  %v98_v13 = vld [vmem:[#allocation5 + $0x88] sm:$0xff] }
  0x2e   :  { %387 = vmatpush.msra.mxu0 %v218_v62  ;;  %437 = vmatpush.msra.mxu1 %v1452_v52  ;;  %v1531_v62 = vsub.f32 %v110_v49, %v1523_v56 }
  0x2f   :  { %215 = vmatpush.msra.mxu3 %v214_v29  ;;  %147 = vmatpush.msra.mxu2 %v1461_v58 }
  0x30   :  { %391 = vmatpush.msra.mxu0 %v224_v7  ;;  %439 = vmatpush.msra.mxu1 %v1461_v58  ;;  %v100_v7 = vld [vmem:[#allocation5 + $0x98] sm:$0xff] }
  0x31   :  { %221 = vmatpush.msra.mxu3 %v220_v35  ;;  %149 = vmatpush.msra.mxu2 %v1470_v0 }
  0x32   :  { %395 = vmatpush.msra.mxu0 %v230_v23  ;;  %441 = vmatpush.msra.mxu1 %v1470_v0 }
  0x33   :  { %227 = vmatpush.msra.mxu3 %v226_v39  ;;  %151 = vmatpush.msra.mxu2 %v1472_v2  ;;  %v82_v39 = vld [vmem:[#allocation5 + $0x8] sm:$0xff] }
  0x34   :  { %399 = vmatpush.msra.mxu0 %v236_v31  ;;  %157 = vmatmul.f32.vlgmr.msra.gmra.mxu2 %v1516_v48 }
  0x35   :  { %260 = vmatpush.msrb.mxu2 %v1389_v14  ;;  %233 = vmatpush.msra.mxu3 %v232_v43  ;;  %v104_v14 = vld [vmem:[#allocation5 + $0xb8] sm:$0xff] }
  0x36   :  { %403 = vmatpush.msra.mxu0 %v242_v37  ;;  %443 = vmatpush.msra.mxu1 %v1472_v2 }
  0x37   :  { %263 = vmatpush.msrb.mxu2 %v1392_v15  ;;  %239 = vmatpush.msra.mxu3 %v238_v50  ;;  %v102_v15 = vld [vmem:[#allocation5 + $0xa8] sm:$0xff] }
  0x38   :  { %407 = vmatpush.msra.mxu0 %v248_v41  ;;  %445 = vmatmul.f32.vlgmr.msra.gmra.mxu1 %v1488_v26  ;;  %v1550_v12 = vand.u32 4294901760, %v102_v15  ;;  %v1656_v41 = vand.u32 4294901760, %v82_v39 }
  0x39   :  { %266 = vmatpush.msrb.mxu2 %v1395_v16  ;;  %245 = vmatpush.msra.mxu3 %v244_v55  ;;  %v1541_v16 = vand.u32 4294901760, %v104_v14 }
  0x3a   :  { %409 = vmatmul.f32.vlgmr.msra.gmra.mxu0 %v1488_v26  ;;  %639 = vmatpush.msrb.mxu1 %v1523_v56  ;;  %v1565_v22 = vsub.f32 %v102_v15, %v1550_v12  ;;  %v1678_v53 = vsub.f32 %v82_v39, %v1656_v41 }
  0x3b   :  { %269 = vmatpush.msrb.mxu2 %v1401_v18  ;;  %251 = vmatpush.msra.mxu3 %v250_v60  ;;  %v1548_v18 = vsub.f32 %v106_v59, %v1533_v1  ;;  %v1556_v21 = vsub.f32 %v104_v14, %v1541_v16 }
  0x3c   :  { %588 = vmatpush.msrb.mxu0 %v1531_v62  ;;  %253 = vmatmul.f32.vlgmr.msra.gmra.mxu3 %v1488_v26  ;;  %v516_v43 = vand.u32 4294901760, %v1565_v22 }
  0x3d   :  { %311 = vmatpush.msrb.mxu3 %v1375_v3  ;;  %272 = vmatpush.msrb.mxu2 %v1404_v19  ;;  %v1558_v3 = vand.u32 4294901760, %v100_v7  ;;  %v96_v19 = vld [vmem:[#allocation5 + $0x78] sm:$0xff] }
  0x3e   :  { %591 = vmatpush.msrb.mxu0 %v1539_v6  ;;  %641 = vmatpush.msrb.mxu1 %v1526_v61  ;;  %v517_v54 = vsub.f32 %v1565_v22, %v516_v43 }
  0x3f   :  { %313 = vmatpush.msrb.mxu3 %v1377_v4  ;;  %275 = vmatpush.msrb.mxu2 %v1413_v25  ;;  %v1567_v4 = vand.u32 4294901760, %v98_v13  ;;  %v94_v25 = vld [vmem:[#allocation5 + $0x68] sm:$0xff]  ;;  %v1574_v23 = vsub.f32 %v100_v7, %v1558_v3 }
  0x40   :  { %594 = vmatpush.msrb.mxu0 %v1548_v18  ;;  %643 = vmatpush.msrb.mxu1 %v1533_v1  ;;  %v518_v14 = vand.u32 4294901760, %v517_v54 }
  0x41   :  { %315 = vmatpush.msrb.mxu3 %v1379_v5  ;;  %278 = vmatpush.msrb.mxu2 %v1419_v28  ;;  %v1576_v5 = vand.u32 4294901760, %v96_v19  ;;  %v92_v28 = vld [vmem:[#allocation5 + $0x58] sm:$0xff]  ;;  %v1583_v29 = vsub.f32 %v98_v13, %v1567_v4  ;;  %v522_v50 = vand.u32 4294901760, %v1574_v23 }
  0x42   :  { %597 = vmatpush.msrb.mxu0 %v1556_v21  ;;  %645 = vmatpush.msrb.mxu1 %v1541_v16 }
  0x43   :  { %317 = vmatpush.msrb.mxu3 %v1381_v9  ;;  %281 = vmatpush.msrb.mxu2 %v1428_v33  ;;  %v1585_v9 = vand.u32 4294901760, %v94_v25  ;;  %v90_v33 = vld [vmem:[#allocation5 + $0x48] sm:$0xff]  ;;  %v1592_v30 = vsub.f32 %v96_v19, %v1576_v5  ;;  %v528_v55 = vand.u32 4294901760, %v1583_v29  ;;  %v523_v59 = vsub.f32 %v1574_v23, %v522_v50 }
  0x44   :  { %600 = vmatpush.msrb.mxu0 %v1565_v22  ;;  %647 = vmatpush.msrb.mxu1 %v1550_v12  ;;  %v789_v22 = vld [vmem:[#allocation8 + $0x50] sm:$0xff] }
  0x45   :  { %319 = vmatpush.msrb.mxu3 %v1383_v10  ;;  %284 = vmatpush.msrb.mxu2 %v1441_v45  ;;  %v1594_v10 = vand.u32 4294901760, %v92_v28  ;;  %v1601_v45 = vsub.f32 %v94_v25, %v1585_v9  ;;  %v534_v60 = vand.u32 4294901760, %v1592_v30  ;;  %v529_v15 = vsub.f32 %v1583_v29, %v528_v55 }
  0x46   :  { %603 = vmatpush.msrb.mxu0 %v1574_v23  ;;  %649 = vmatpush.msrb.mxu1 %v1558_v3  ;;  %v524_v13 = vand.u32 4294901760, %v523_v59  ;;  %v787_v23 = vld [vmem:[#allocation8 + $0x40] sm:$0xff]  ;;  %v785_v59 = vld [vmem:[#allocation8 + $0x30] sm:$0xff] }
  0x47   :  { %321 = vmatpush.msrb.mxu3 %v1385_v11  ;;  %287 = vmatpush.msrb.mxu2 %v1450_v51  ;;  %v1603_v11 = vand.u32 4294901760, %v90_v33  ;;  %v88_v51 = vld [vmem:[#allocation5 + $0x38] sm:$0xff]  ;;  %v1610_v31 = vsub.f32 %v92_v28, %v1594_v10  ;;  %v540_v7 = vand.u32 4294901760, %v1601_v45  ;;  %v530_v25 = vand.u32 4294901760, %v529_v15 }
  0x48   :  { %606 = vmatpush.msrb.mxu0 %v1583_v29  ;;  %651 = vmatpush.msrb.mxu1 %v1567_v4  ;;  %v1617_v35 = vand.u32 4294901760, %v88_v51  ;;  %v1782_v29 = vand.u32 4294901760, %v789_v22 }
  0x49   :  { %323 = vmatpush.msrb.mxu3 %v1397_v17  ;;  %290 = vmatpush.msrb.mxu2 %v1459_v57  ;;  %v86_v17 = vld [vmem:[#allocation5 + $0x28] sm:$0xff]  ;;  %v492_v57 = vand.u32 4294901760, %v1531_v62  ;;  %v546_v19 = vand.u32 4294901760, %v1610_v31  ;;  %v541_v28 = vsub.f32 %v1601_v45, %v540_v7 }
  0x4a   :  { %609 = vmatpush.msrb.mxu0 %v1592_v30  ;;  %653 = vmatpush.msrb.mxu1 %v1576_v5  ;;  %v1639_v36 = vsub.f32 %v88_v51, %v1617_v35 }
  0x4b   :  { %325 = vmatpush.msrb.mxu3 %v1406_v20  ;;  %293 = vmatpush.msrb.mxu2 %v1468_v63  ;;  %v1620_v20 = vsub.f32 %v90_v33, %v1603_v11  ;;  %v84_v63 = vld [vmem:[#allocation5 + $0x18] sm:$0xff] }
  0x4c   :  { %612 = vmatpush.msrb.mxu0 %v1601_v45  ;;  %655 = vmatpush.msrb.mxu1 %v1585_v9  ;;  %v1641_v37 = vand.u32 4294901760, %v84_v63 }
  0x4d   :  { %327 = vmatpush.msrb.mxu3 %v1425_v32  ;;  %296 = vmatpush.msrb.mxu2 %v1479_v8  ;;  %v498_v32 = vand.u32 4294901760, %v1539_v6  ;;  %v1627_v8 = vand.u32 4294901760, %v86_v17  ;;  %v552_v33 = vand.u32 4294901760, %v1620_v20 }
  0x4e   :  { %615 = vmatpush.msrb.mxu0 %v1610_v31  ;;  %657 = vmatpush.msrb.mxu1 %v1594_v10  ;;  %v1665_v47 = vsub.f32 %v84_v63, %v1641_v37  ;;  %v558_v63 = vand.u32 4294901760, %v1639_v36 }
  0x4f   :  { %329 = vmatpush.msrb.mxu3 %v1438_v44  ;;  %299 = vmatpush.msrb.mxu2 %v1486_v24  ;;  %v493_v44 = vsub.f32 %v1531_v62, %v492_v57  ;;  %v504_v24 = vand.u32 4294901760, %v1548_v18  ;;  %v1652_v40 = vsub.f32 %v86_v17, %v1627_v8  ;;  %v547_v17 = vsub.f32 %v1610_v31, %v546_v19 }
  0x50   :  { %618 = vmatpush.msrb.mxu0 %v1620_v20  ;;  %659 = vmatpush.msrb.mxu1 %v1603_v11 }
  0x51   :  { %331 = vmatpush.msrb.mxu3 %v1443_v46  ;;  %302 = vmatpush.msrb.mxu2 %v1491_v27  ;;  %v499_v46 = vsub.f32 %v1539_v6, %v498_v32  ;;  %v510_v27 = vand.u32 4294901760, %v1556_v21  ;;  %v505_v42 = vsub.f32 %v1548_v18, %v504_v24  ;;  %v564_v39 = vand.u32 4294901760, %v1652_v40  ;;  %v792_v6 = vld [vmem:[#allocation8 + $0x68] sm:$0xff]  ;;  %v790_v18 = vld [vmem:[#allocation8 + $0x58] sm:$0xff] }
  0x52   :  { %305 = vmatmul.f32.vlgmr.msrb.gmra.mxu2 %v1498_v34  ;;  %621 = vmatpush.msrb.mxu0 %v1639_v36  ;;  %v548_v45 = vand.u32 4294901760, %v547_v17 }
  0x53   :  { %451 = vmatpush.msra.mxu2 %v1523_v56  ;;  %333 = vmatpush.msrb.mxu3 %v1452_v52  ;;  %v494_v52 = vand.u32 4294901760, %v493_v44  ;;  %v511_v49 = vsub.f32 %v1556_v21, %v510_v27  ;;  %v542_v44 = vand.u32 4294901760, %v541_v28  ;;  %v1774_v21 = vand.u32 4294901760, %v792_v6  ;;  %v783_v28 = vld [vmem:[#allocation8 + $0x20] sm:$0xff] }
  0x54   :  { %624 = vmatpush.msrb.mxu0 %v1652_v40  ;;  %661 = vmatpush.msrb.mxu1 %v1617_v35 }
  0x55   :  { %453 = vmatpush.msra.mxu2 %v1526_v61  ;;  %335 = vmatpush.msrb.mxu3 %v1461_v58  ;;  %v500_v58 = vand.u32 4294901760, %v499_v46  ;;  %v559_v46 = vsub.f32 %v1639_v36, %v558_v63 }
  0x56   :  { %627 = vmatpush.msrb.mxu0 %v1665_v47  ;;  %663 = vmatpush.msrb.mxu1 %v1627_v8 }
  0x57   :  { %455 = vmatpush.msra.mxu2 %v1533_v1  ;;  %337 = vmatpush.msrb.mxu3 %v1470_v0  ;;  %v506_v0 = vand.u32 4294901760, %v505_v42  ;;  %v565_v42 = vsub.f32 %v1652_v40, %v564_v39 }
  0x58   :  { %630 = vmatpush.msrb.mxu0 %v1678_v53  ;;  %665 = vmatpush.msrb.mxu1 %v1641_v37 }
  0x59   :  { %457 = vmatpush.msra.mxu2 %v1541_v16  ;;  %339 = vmatpush.msrb.mxu3 %v1472_v2  ;;  %v512_v2 = vand.u32 4294901760, %v511_v49 }
  0x5a   :  { %343 = vmatmul.f32.vlgmr.msrb.gmra.mxu3 %v1505_v38  ;;  %633 = vmatmul.f32.vlgmr.msrb.gmra.mxu0 %v1498_v34  ;;  %v535_v34 = vsub.f32 %v1592_v30, %v534_v60  ;;  %v1786_v30 = vand.u32 4294901760, %v787_v23 }
  0x5b   :  { %495 = vmatpush.msra.mxu3 %v494_v52  ;;  %459 = vmatpush.msra.mxu2 %v1550_v12  ;;  %v570_v52 = vand.u32 4294901760, %v1665_v47 }
  0x5c   :  { %667 = vmatpush.msrb.mxu1 %v1656_v41  ;;  %v536_v51 = vand.u32 4294901760, %v535_v34 }
  0x5d   :  { %501 = vmatpush.msra.mxu3 %v500_v58  ;;  %461 = vmatpush.msra.mxu2 %v1558_v3  ;;  %v576_v58 = vand.u32 4294901760, %v1678_v53  ;;  %v571_v49 = vsub.f32 %v1665_v47, %v570_v52 }
  0x5e   :  { %671 = vmatmul.f32.vlgmr.msrb.gmra.mxu1 %v1505_v38  ;;  %v553_v38 = vsub.f32 %v1620_v20, %v552_v33  ;;  %v560_v20 = vand.u32 4294901760, %v559_v46 }
  0x5f   :  { %507 = vmatpush.msra.mxu3 %v506_v0  ;;  %463 = vmatpush.msra.mxu2 %v1567_v4  ;;  %v566_v0 = vand.u32 4294901760, %v565_v42  ;;  %v577_v36 = vsub.f32 %v1678_v53, %v576_v58  ;;  %v572_v54 = vand.u32 4294901760, %v571_v49  ;;  %v1860_v42 = vand.u32 4294901760, %v783_v28 }
  0x60   :  { %v554_v31 = vand.u32 4294901760, %v553_v38 }
  0x61   :  { %513 = vmatpush.msra.mxu3 %v512_v2  ;;  %465 = vmatpush.msra.mxu2 %v1576_v5  ;;  %v578_v40 = vand.u32 4294901760, %v577_v36 }
  0x63   :  { %519 = vmatpush.msra.mxu3 %v518_v14  ;;  %467 = vmatpush.msra.mxu2 %v1585_v9 }
  0x65   :  { %525 = vmatpush.msra.mxu3 %v524_v13  ;;  %469 = vmatpush.msra.mxu2 %v1594_v10 }
  0x67   :  { %531 = vmatpush.msra.mxu3 %v530_v25  ;;  %471 = vmatpush.msra.mxu2 %v1603_v11  ;;  %v784_v25 = vld [vmem:[#allocation8 + $0x28] sm:$0xff] }
  0x69   :  { %537 = vmatpush.msra.mxu3 %v536_v51  ;;  %473 = vmatpush.msra.mxu2 %v1617_v35 }
  0x6b   :  { %543 = vmatpush.msra.mxu3 %v542_v44  ;;  %475 = vmatpush.msra.mxu2 %v1627_v8  ;;  %v782_v44 = vld [vmem:[#allocation8 + $0x18] sm:$0xff] }
  0x6c   :  { %v1865_v49 = vand.u32 4294901760, %v782_v44 }
  0x6d   :  { %549 = vmatpush.msra.mxu3 %v548_v45  ;;  %477 = vmatpush.msra.mxu2 %v1641_v37  ;;  %v781_v45 = vld [vmem:[#allocation8 + $0x10] sm:$0xff] }
  0x6f   :  { %555 = vmatpush.msra.mxu3 %v554_v31  ;;  %479 = vmatpush.msra.mxu2 %v1656_v41  ;;  %v1858_v31 = vand.u32 4294901760, %v784_v25 }
  0x70   :  { %485 = vmatmul.f32.vlgmr.msra.gmra.mxu2 %v1516_v48  ;;  %v794_v48 = vld [vmem:[#allocation8 + $0x78] sm:$0xff] }
  0x71   :  { %679 = vmatpush.msrb.mxu2 %v492_v57  ;;  %561 = vmatpush.msra.mxu3 %v560_v20  ;;  %v1794_v57 = vsub.f32 %v792_v6, %v1774_v21  ;;  %v779_v6 = vld [vmem:[#allocation8] sm:$0xff] }
  0x73   :  { %683 = vmatpush.msrb.mxu2 %v498_v32  ;;  %567 = vmatpush.msra.mxu3 %v566_v0  ;;  %v854_v47 = vand.u32 4294901760, %v1794_v57  ;;  %v780_v0 = vld [vmem:[#allocation8 + $0x8] sm:$0xff] }
  0x75   :  { %687 = vmatpush.msrb.mxu2 %v504_v24  ;;  %573 = vmatpush.msra.mxu3 %v572_v54  ;;  %v855_v14 = vsub.f32 %v1794_v57, %v854_v47  ;;  %v1871_v54 = vsub.f32 %v784_v25, %v1858_v31 }
  0x77   :  { %691 = vmatpush.msrb.mxu2 %v510_v27  ;;  %579 = vmatpush.msra.mxu3 %v578_v40  ;;  %v786_v27 = vld [vmem:[#allocation8 + $0x38] sm:$0xff]  ;;  %v1875_v40 = vsub.f32 %v783_v28, %v1860_v42 }
  0x78   :  { %581 = vmatmul.f32.vlgmr.msra.gmra.mxu3 %v1488_v26 }
  0x79   :  { %743 = vmatpush.msrb.mxu3 %v1523_v56  ;;  %695 = vmatpush.msrb.mxu2 %v516_v43  ;;  %v1761_v56 = vand.u32 4294901760, %v794_v48 }
  0x7b   :  { %745 = vmatpush.msrb.mxu3 %v1526_v61  ;;  %699 = vmatpush.msrb.mxu2 %v522_v50  ;;  %v793_v61 = vld [vmem:[#allocation8 + $0x70] sm:$0xff]  ;;  %v1764_v62 = vsub.f32 %v794_v48, %v1761_v56  ;;  %v1877_v48 = vand.u32 4294901760, %v781_v45 }
  0x7c   :  { %800 = vmatpush.msra.mxu0 %v1761_v56 }
  0x7d   :  { %747 = vmatpush.msrb.mxu3 %v1533_v1  ;;  %703 = vmatpush.msrb.mxu2 %v528_v55  ;;  %v1766_v1 = vand.u32 4294901760, %v793_v61 }
  0x7f   :  { %749 = vmatpush.msrb.mxu3 %v1541_v16  ;;  %707 = vmatpush.msrb.mxu2 %v534_v60  ;;  %v791_v16 = vld [vmem:[#allocation8 + $0x60] sm:$0xff] }
  0x80   :  { %802 = vmatpush.msra.mxu0 %v1766_v1 }
  0x81   :  { %751 = vmatpush.msrb.mxu3 %v1550_v12  ;;  %711 = vmatpush.msrb.mxu2 %v540_v7  ;;  %v842_v12 = vand.u32 4294901760, %v1764_v62  ;;  %v1832_v7 = vand.u32 4294901760, %v786_v27 }
  0x82   :  { %804 = vmatpush.msra.mxu0 %v1774_v21 }
  0x83   :  { %753 = vmatpush.msrb.mxu3 %v1558_v3  ;;  %715 = vmatpush.msrb.mxu2 %v546_v19  ;;  %v1776_v3 = vand.u32 4294901760, %v791_v16  ;;  %v1843_v17 = vsub.f32 %v786_v27, %v1832_v7  ;;  %v908_v27 = vand.u32 4294901760, %v1875_v40 }
  0x85   :  { %755 = vmatpush.msrb.mxu3 %v1567_v4  ;;  %719 = vmatpush.msrb.mxu2 %v552_v33  ;;  %v788_v4 = vld [vmem:[#allocation8 + $0x48] sm:$0xff]  ;;  %v856_v33 = vand.u32 4294901760, %v855_v14  ;;  %v890_v46 = vand.u32 4294901760, %v1843_v17 }
  0x86   :  { %806 = vmatpush.msra.mxu0 %v1776_v3 }
  0x87   :  { %757 = vmatpush.msrb.mxu3 %v1576_v5  ;;  %723 = vmatpush.msrb.mxu2 %v558_v63  ;;  %v1780_v5 = vand.u32 4294901760, %v790_v18  ;;  %v1846_v63 = vand.u32 4294901760, %v785_v59 }
  0x89   :  { %759 = vmatpush.msrb.mxu3 %v1585_v9  ;;  %727 = vmatpush.msrb.mxu2 %v564_v39  ;;  %v1784_v9 = vand.u32 4294901760, %v788_v4  ;;  %v1802_v32 = vsub.f32 %v790_v18, %v1780_v5  ;;  %v902_v18 = vand.u32 4294901760, %v1871_v54 }
  0x8a   :  { %808 = vmatpush.msra.mxu0 %v1780_v5 }
  0x8b   :  { %761 = vmatpush.msrb.mxu3 %v1594_v10  ;;  %731 = vmatpush.msrb.mxu2 %v570_v52  ;;  %v843_v10 = vsub.f32 %v1764_v62, %v842_v12  ;;  %v1808_v24 = vsub.f32 %v788_v4, %v1784_v9  ;;  %v866_v53 = vand.u32 4294901760, %v1802_v32  ;;  %v1855_v52 = vsub.f32 %v785_v59, %v1846_v63 }
  0x8c   :  { %810 = vmatpush.msra.mxu0 %v1782_v29  ;;  %v1888_v4 = vand.u32 4294901760, %v780_v0 }
  0x8d   :  { %763 = vmatpush.msrb.mxu3 %v1603_v11  ;;  %735 = vmatpush.msrb.mxu2 %v576_v58  ;;  %v878_v2 = vand.u32 4294901760, %v1808_v24  ;;  %v867_v13 = vsub.f32 %v1802_v32, %v866_v53  ;;  %v896_v36 = vand.u32 4294901760, %v1855_v52 }
  0x8e   :  { %737 = vmatmul.f32.vlgmr.msrb.gmra.mxu2 %v1488_v26  ;;  %812 = vmatpush.msra.mxu0 %v1784_v9 }
  0x8f   :  { %765 = vmatpush.msrb.mxu3 %v1617_v35  ;;  %943 = vmatpush.msra.mxu2 %v1764_v62  ;;  %v1797_v35 = vsub.f32 %v791_v16, %v1776_v3  ;;  %v868_v38 = vand.u32 4294901760, %v867_v13  ;;  %v879_v39 = vsub.f32 %v1808_v24, %v878_v2  ;;  %v891_v16 = vsub.f32 %v1843_v17, %v890_v46 }
  0x90   :  { %814 = vmatpush.msra.mxu0 %v1786_v30 }
  0x91   :  { %767 = vmatpush.msrb.mxu3 %v1627_v8  ;;  %v1805_v8 = vsub.f32 %v789_v22, %v1782_v29  ;;  %v860_v50 = vand.u32 4294901760, %v1797_v35  ;;  %v1886_v22 = vsub.f32 %v782_v44, %v1865_v49  ;;  %v892_v59 = vand.u32 4294901760, %v891_v16 }
  0x92   :  { %816 = vmatpush.msra.mxu0 %v1832_v7 }
  0x93   :  { %769 = vmatpush.msrb.mxu3 %v1641_v37  ;;  %v1811_v37 = vsub.f32 %v787_v23, %v1786_v30  ;;  %v872_v55 = vand.u32 4294901760, %v1805_v8  ;;  %v861_v15 = vsub.f32 %v1797_v35, %v860_v50  ;;  %v914_v14 = vand.u32 4294901760, %v1886_v22 }
  0x94   :  { %818 = vmatpush.msra.mxu0 %v1846_v63 }
  0x95   :  { %771 = vmatpush.msrb.mxu3 %v1656_v41  ;;  %v844_v41 = vand.u32 4294901760, %v843_v10  ;;  %v873_v34 = vsub.f32 %v1805_v8, %v872_v55  ;;  %v884_v19 = vand.u32 4294901760, %v1811_v37  ;;  %v862_v51 = vand.u32 4294901760, %v861_v15 }
  0x96   :  { %773 = vmatmul.f32.vlgmr.msrb.gmra.mxu3 %v1488_v26  ;;  %v1772_v26 = vsub.f32 %v793_v61, %v1766_v1  ;;  %v880_v61 = vand.u32 4294901760, %v879_v39  ;;  %v897_v10 = vsub.f32 %v1855_v52, %v896_v36  ;;  %820 = vmatpush.msra.mxu0 %v1858_v31  ;;  %v1909_v15 = vsub.f32 %v780_v0, %v1888_v4 }
  0x97   :  { %996 = vmatpush.msra.mxu3 %v1761_v56  ;;  %845 = vmatpush.msra.mxu1 %v844_v41  ;;  %v874_v58 = vand.u32 4294901760, %v873_v34  ;;  %v885_v20 = vsub.f32 %v1811_v37, %v884_v19  ;;  %v1898_v41 = vsub.f32 %v781_v45, %v1877_v48  ;;  %v909_v34 = vsub.f32 %v1875_v40, %v908_v27 }
  0x98   :  { %v848_v11 = vand.u32 4294901760, %v1772_v26  ;;  %946 = vmatpush.msra.mxu2 %v1772_v26  ;;  %v898_v13 = vand.u32 4294901760, %v897_v10  ;;  %822 = vmatpush.msra.mxu0 %v1860_v42  ;;  %v926_v44 = vand.u32 4294901760, %v1909_v15 }
  0x99   :  { %998 = vmatpush.msra.mxu3 %v1766_v1  ;;  %v886_v23 = vand.u32 4294901760, %v885_v20  ;;  %v920_v25 = vand.u32 4294901760, %v1898_v41 }
  0x9a   :  { %v849_v43 = vsub.f32 %v1772_v26, %v848_v11  ;;  %949 = vmatpush.msra.mxu2 %v1794_v57  ;;  %824 = vmatpush.msra.mxu0 %v1865_v49  ;;  %v927_v20 = vsub.f32 %v1909_v15, %v926_v44 }
  0x9b   :  { %1000 = vmatpush.msra.mxu3 %v1774_v21  ;;  %v921_v39 = vsub.f32 %v1898_v41, %v920_v25 }
  0x9c   :  { %v850_v60 = vand.u32 4294901760, %v849_v43  ;;  %952 = vmatpush.msra.mxu2 %v1797_v35  ;;  %v1900_v43 = vand.u32 4294901760, %v779_v6  ;;  %826 = vmatpush.msra.mxu0 %v1877_v48 }
  0x9d   :  { %1002 = vmatpush.msra.mxu3 %v1776_v3  ;;  %v922_v0 = vand.u32 4294901760, %v921_v39 }
  0x9e   :  { %851 = vmatpush.msra.mxu1 %v850_v60  ;;  %955 = vmatpush.msra.mxu2 %v1802_v32  ;;  %v903_v60 = vsub.f32 %v1871_v54, %v902_v18  ;;  %v1919_v28 = vsub.f32 %v779_v6, %v1900_v43  ;;  %v928_v6 = vand.u32 4294901760, %v927_v20 }
  0x9f   :  { %1004 = vmatpush.msra.mxu3 %v1780_v5  ;;  %828 = vmatpush.msra.mxu0 %v1888_v4 }
  0xa0   :  { %857 = vmatpush.msra.mxu1 %v856_v33  ;;  %958 = vmatpush.msra.mxu2 %v1805_v8  ;;  %v904_v33 = vand.u32 4294901760, %v903_v60  ;;  %v932_v45 = vand.u32 4294901760, %v1919_v28 }
  0xa1   :  { %1006 = vmatpush.msra.mxu3 %v1782_v29  ;;  %830 = vmatpush.msra.mxu0 %v1900_v43 }
  0xa2   :  { %863 = vmatpush.msra.mxu1 %v862_v51  ;;  %961 = vmatpush.msra.mxu2 %v1808_v24  ;;  %v915_v51 = vsub.f32 %v1886_v22, %v914_v14 }
  0xa3   :  { %1008 = vmatpush.msra.mxu3 %v1784_v9  ;;  %1037 = vmatpush.msrb.mxu0 %v842_v12  ;;  %v111_v12 = vld [vmem:[#allocation7] sm:$0x3] }
  0xa4   :  { %869 = vmatpush.msra.mxu1 %v868_v38  ;;  %964 = vmatpush.msra.mxu2 %v1811_v37  ;;  %v910_v38 = vand.u32 4294901760, %v909_v34 }
  0xa5   :  { %1010 = vmatpush.msra.mxu3 %v1786_v30  ;;  %1041 = vmatpush.msrb.mxu0 %v848_v11 }
  0xa6   :  { %875 = vmatpush.msra.mxu1 %v874_v58  ;;  %967 = vmatpush.msra.mxu2 %v1843_v17  ;;  %v916_v58 = vand.u32 4294901760, %v915_v51 }
  0xa7   :  { %1012 = vmatpush.msra.mxu3 %v1832_v7  ;;  %1045 = vmatpush.msrb.mxu0 %v854_v47 }
  0xa8   :  { %881 = vmatpush.msra.mxu1 %v880_v61  ;;  %970 = vmatpush.msra.mxu2 %v1855_v52  ;;  %v933_v61 = vsub.f32 %v1919_v28, %v932_v45 }
  0xa9   :  { %1014 = vmatpush.msra.mxu3 %v1846_v63  ;;  %1049 = vmatpush.msrb.mxu0 %v860_v50 }
  0xaa   :  { %887 = vmatpush.msra.mxu1 %v886_v23  ;;  %973 = vmatpush.msra.mxu2 %v1871_v54  ;;  %v934_v16 = vand.u32 4294901760, %v933_v61 }
  0xab   :  { %1016 = vmatpush.msra.mxu3 %v1858_v31  ;;  %1053 = vmatpush.msrb.mxu0 %v866_v53 }
  0xac   :  { %893 = vmatpush.msra.mxu1 %v892_v59  ;;  %976 = vmatpush.msra.mxu2 %v1875_v40  ;;  %v1191_v40 = vld [vmem:[%s2003_s4] ss:$0 sm:$0xff]  ;;  %s1332_s4 = smov [#allocation10]  }
  0xad   :  { %1018 = vmatpush.msra.mxu3 %v1860_v42  ;;  %1057 = vmatpush.msrb.mxu0 %v872_v55  ;;  %s1168_s15 = sshll.u32 %s1332_s4, 4  ;;  %s1169_s15 = int_to_ptr.vmem [resolvable:$true] %s1168_s15 }
  0xae   :  { %899 = vmatpush.msra.mxu1 %v898_v13  ;;  %979 = vmatpush.msra.mxu2 %v1886_v22 }
  0xaf   :  { %1020 = vmatpush.msra.mxu3 %v1865_v49  ;;  %1061 = vmatpush.msrb.mxu0 %v878_v2 }
  0xb0   :  { %905 = vmatpush.msra.mxu1 %v904_v33  ;;  %982 = vmatpush.msra.mxu2 %v1898_v41 }
  0xb1   :  { %1022 = vmatpush.msra.mxu3 %v1877_v48  ;;  %1065 = vmatpush.msrb.mxu0 %v884_v19 }
  0xb2   :  { %911 = vmatpush.msra.mxu1 %v910_v38  ;;  %985 = vmatpush.msra.mxu2 %v1909_v15 }
  0xb3   :  { %1024 = vmatpush.msra.mxu3 %v1888_v4  ;;  %1069 = vmatpush.msrb.mxu0 %v890_v46 }
  0xb4   :  { %917 = vmatpush.msra.mxu1 %v916_v58  ;;  %988 = vmatpush.msra.mxu2 %v1919_v28 }
  0xb5   :  { %1026 = vmatpush.msra.mxu3 %v1900_v43  ;;  %1073 = vmatpush.msrb.mxu0 %v896_v36  ;;  %v446_v11 = vpop.f32.mrf.mxu1 }
  0xb6   :  { %923 = vmatpush.msra.mxu1 %v922_v0 }
  0xb7   :  { %v158_v62 = vpop.f32.mrf.mxu2  ;;  %1077 = vmatpush.msrb.mxu0 %v902_v18 }
  0xb8   :  { %929 = vmatpush.msra.mxu1 %v928_v6 }
  0xb9   :  { %1081 = vmatpush.msrb.mxu0 %v908_v27 }
  0xba   :  { %935 = vmatpush.msra.mxu1 %v934_v16 }
  0xbb   :  { %1085 = vmatpush.msrb.mxu0 %v914_v14 }
  0xbc   :  { %1104 = vmatpush.msrb.mxu1 %v1761_v56 }
  0xbd   :  { %1089 = vmatpush.msrb.mxu0 %v920_v25 }
  0xbe   :  { %1106 = vmatpush.msrb.mxu1 %v1766_v1 }
  0xbf   :  { %v254_v56 = vpop.f32.mrf.mxu3  ;;  %1093 = vmatpush.msrb.mxu0 %v926_v44 }
  0xc0   :  { %1108 = vmatpush.msrb.mxu1 %v1774_v21  ;;  %v113_v21 = vperm.slane %v111_v12, 0 }
  0xc1   :  { %1097 = vmatpush.msrb.mxu0 %v932_v45 }
  0xc2   :  { %1110 = vmatpush.msrb.mxu1 %v1776_v3  ;;  %v114_v3 = vperm.slane %v111_v12, 1 }
  0xc4   :  { %1112 = vmatpush.msrb.mxu1 %v1780_v5  ;;  %v410_v5 = vpop.f32.mrf.mxu0 }
  0xc6   :  { %1114 = vmatpush.msrb.mxu1 %v1782_v29 }
  0xc8   :  { %1116 = vmatpush.msrb.mxu1 %v1784_v9  ;;  %v159_v9 = vadd.f32 %v158_v62, %v113_v21 }
  0xca   :  { %1118 = vmatpush.msrb.mxu1 %v1786_v30  ;;  %v255_v35 = vadd.f32 %v254_v56, %v159_v9 }
  0xcc   :  { %1120 = vmatpush.msrb.mxu1 %v1832_v7 }
  0xce   :  { %1122 = vmatpush.msrb.mxu1 %v1846_v63 }
  0xd0   :  { %1124 = vmatpush.msrb.mxu1 %v1858_v31 }
  0xd2   :  { %1126 = vmatpush.msrb.mxu1 %v1860_v42 }
  0xd4   :  { %1128 = vmatpush.msrb.mxu1 %v1865_v49 }
  0xd5   :  { %v306_v1 = vpop.f32.mrf.mxu2 }
  0xd6   :  { %1130 = vmatpush.msrb.mxu1 %v1877_v48  ;;  %v307_v24 = vadd.f32 %v306_v1, %v255_v35 }
  0xd7   :  { %v634_v8 = vpop.f32.mrf.mxu0 }
  0xd8   :  { %1132 = vmatpush.msrb.mxu1 %v1888_v4 }
  0xda   :  { %1134 = vmatpush.msrb.mxu1 %v1900_v43 }
  0xdb   :  { %v672_v47 = vpop.f32.mrf.mxu1 }
  0xdd   :  { %v344_v26 = vpop.f32.mrf.mxu3 }
  0xde   :  { %v345_v50 = vadd.f32 %v344_v26, %v307_v24 }
  0xe0   :  { %v411_v2 = vadd.f32 %v410_v5, %v345_v50 }
  0xe2   :  { %v447_v17 = vadd.f32 %v446_v11, %v411_v2 }
  0xf3   :  { %v486_v29 = vpop.f32.mrf.mxu2 }
  0xf4   :  { %v487_v30 = vadd.f32 %v486_v29, %v114_v3 }
  0xfb   :  { %v582_v57 = vpop.f32.mrf.mxu3 }
  0xfc   :  { %v583_v32 = vadd.f32 %v582_v57, %v487_v30 }
  0xfe   :  { %v635_v37 = vadd.f32 %v634_v8, %v583_v32 }
 0x100   :  { %v673_v53 = vadd.f32 %v672_v47, %v635_v37 }
 0x111   :  { %v738_v55 = vpop.f32.mrf.mxu2 }
 0x112   :  { %v739_v7 = vadd.f32 %v738_v55, %v673_v53 }
 0x119   :  { %v774_v19 = vpop.f32.mrf.mxu3 }
 0x11a   :  { %v775_v63 = vadd.f32 %v774_v19, %v739_v7 }
 0x11c   :  { %v777_v46 = vmax.f32 %v447_v17, %v775_v63 }
 0x11e   :  { %v778_v52 = vmax.f32 %v777_v46, 0.0 }
 0x120   :  { %v831_v31 = vand.u32 4294901760, %v778_v52 }
 0x122   :  { %v832_v42 = vsub.f32 %v778_v52, %v831_v31  ;;  %937 = vmatmul.f32.vlgmr.msra.gmra.mxu1 %v831_v31 }
 0x124   :  { %991 = vmatmul.f32.vlgmr.msra.gmra.mxu2 %v832_v42  ;;  %v833_v49 = vand.u32 4294901760, %v832_v42 }
 0x126   :  { %1030 = vmatmul.f32.vlgmr.msra.gmra.mxu3 %v833_v49  ;;  %v834_v36 = vsub.f32 %v832_v42, %v833_v49 }
 0x128   :  { %v835_v54 = vand.u32 4294901760, %v834_v36 }
 0x12a   :  { %836 = vmatmul.f32.vlgmr.msra.gmra.mxu0 %v835_v54  ;;  %1136 = vmatmul.f32.vlgmr.msrb.gmra.mxu1 %v831_v31 }
 0x132   :  { %1099 = vmatmul.f32.vlgmr.msrb.gmra.mxu0 %v831_v31 }
 0x19f   :  { %v938_v48 = vpop.f32.mrf.mxu1 }
 0x1a7   :  { %v837_v18 = vpop.f32.mrf.mxu0  ;;  %v992_v23 = vpop.f32.mrf.mxu2 }
 0x1a8   :  { %v838_v22 = vadd.f32 %v1191_v40, %v837_v18  ;;  %v1137_v60 = vpop.f32.mrf.mxu1 }
 0x1a9   :  { %v1031_v27 = vpop.f32.mrf.mxu3 }
 0x1aa   :  { %v939_v4 = vadd.f32 %v938_v48, %v838_v22 }
 0x1ac   :  { %v993_v10 = vadd.f32 %v992_v23, %v939_v4 }
 0x1ae   :  { %v1032_v41 = vadd.f32 %v1031_v27, %v993_v10 }
 0x1af   :  { %v1100_v43 = vpop.f32.mrf.mxu0 }
 0x1b0   :  { %v1101_v59 = vadd.f32 %v1100_v43, %v1032_v41 }
 0x1b2   :  { %v1138_v14 = vadd.f32 %v1137_v60, %v1101_v59 }
 0x1b4   :  { %1140 = vmax.xlane.f32.xlu0 %v1138_v14 }
 0x227   :  { %v1141_v15 = vpop.xlane.xlu0 %1140 }
 0x228   :  { %v1142_v13 = vsub.f32 %v1138_v14, %v1141_v15 }
 0x22a   :  { %v1143_v34 = vmul.f32 1.442695, %v1142_v13 }
 0x22c   :  { %1192 = vpow2.f32 %v1143_v34 }
 0x232   :  { %v1193_v25 = vpop.eup %1192 }
 0x233   :  { %1145 = vadd.xlane.f32.xlu0 %v1193_v25 }
 0x2a6   :  { %v1146_v28 = vpop.xlane.xlu0 %1145 }
 0x2a7   :  { %1194 = vrcp.f32 %v1146_v28  ;;  %v1158_v38 = vand.u32 2147483648, %v1146_v28  ;;  %v1156_v45 = vand.u32 2147483647, %v1146_v28  ;;  %vm1152_vm2 = vweird.f32 %v1146_v28 }
 0x2a9   :  { %v1159_v20 = vor.u32 1.1754944e-38, %v1158_v38  ;;  %vm1157_vm4 = vcmp.eq.f32.partialorder %v1156_v45, 8.507059e+37 }
 0x2ad   :  { %v1195_v33 = vpop.eup %1194 }
 0x2ae   :  { %v1148_v51 = vmul.f32 %v1195_v33, %v1146_v28  ;;  %vm1153_vm1 = vweird.f32 %v1195_v33 }
 0x2af   :  { %vm1154_vm3 = vmor %vm1152_vm2, %vm1153_vm1 }
 0x2b0   :  { %v1149_v44 = vsub.f32 1.0, %v1148_v51 }
 0x2b2   :  { %v1150_v39 = vmul.f32 %v1195_v33, %v1149_v44 }
 0x2b4   :  { %v1151_v58 = vadd.f32 %v1195_v33, %v1150_v39 }
 0x2b6   :  { %v1155_v0 = vsel %vm1154_vm3, %v1195_v33, %v1151_v58 }
 0x2b7   :  { %v1160_v61 = vsel %vm1157_vm4, %v1159_v20, %v1155_v0 }
 0x2b8   :  { %v1161_v6 = vmul.f32 %v1193_v25, %v1160_v61 }
 0x2ba   :  { %1162 = vst [vmem:[#allocation10] sm:$0xff] %v1161_v6 }
 0x2bb   :  { %1173 = dma.vmem_to_hbm [thread:$0]  %s1169_s15, 128, %s1171_s18, [#allocation4]  }
 0x2bc   :  { %1322 = dma.done.wait [#allocation4], 128  }
 0x2bd   :  { %1323 = vsyncadd [#allocation4], 4294967168 }
 0x2be   :  { %1178 = vsyncpa [#allocation3], 1 }
 0x2bf   :  { %1179 = vsyncpa [#allocation6], 1 }
 0x2c0   :  { %1180 = vsyncpa [#allocation9], 1 }
 0x2c1   :  { %1181 = vsyncpa [#allocation4], 1 }

</bundles_post_ra>
